<compile_context>
chip_gen: v6e
topology: v6e:2x2x1
jax: 0.10.0
libtpu: 0.0.40
codegen_flags: <defaults>
</compile_context>

<pallas_src>
import functools
from typing import NamedTuple

import jax
import jax.numpy as jnp
from jax.experimental import pallas as pl
from jax.experimental.pallas import tpu as pltpu

F = 8  # batch rows folded into the lane dimension


def residual_mlp_kernel(x_ref, w01_ref, w1_ref, b0_ref, b1_ref, o_ref, *,
                        fold_h1, tanh_dtype):
    # x streamed from HBM in its native dtype; cast to bf16 in VMEM (avoids a
    # separate, un-hidden host-side cast pass over the whole batch).
    x = x_ref[...].astype(w01_ref.dtype)                              # (tbf, F*D) bf16
    # Fused layer-0: one MXU matmul against [W0_blk | Wprob_blk] (K=128, N=512),
    # split at the vreg-aligned 256-lane boundary into h_pre / p_pre.
    hp = jnp.dot(x, w01_ref[...], preferred_element_type=jnp.float32)  # (tbf, 512) f32
    h_pre = hp[:, :fold_h1] + b0_ref[...]                             # (tbf, F*H1) f32
    p_pre = hp[:, fold_h1:]                                           # (tbf, F*H2) f32
    h = jnp.tanh(h_pre.astype(tanh_dtype))                            # EUP; bf16 on v6e/v7x
    # Layer 1: h @ W1_blk + prob-path + b1, f32 accumulate, then tanh.
    y_pre = (jnp.dot(h.astype(w1_ref.dtype), w1_ref[...],
                     preferred_element_type=jnp.float32)
             + p_pre + b1_ref[...])
    y = jnp.tanh(y_pre.astype(tanh_dtype))
    o_ref[...] = y.astype(o_ref.dtype)                                # dense 256-lane store


class FoldedParams(NamedTuple):
    w01: jax.Array   # (F*D,  F*(H1+H2)) block-diag [W0 | Wprob], compute dtype
    w1:  jax.Array   # (F*H1, F*H2)      block-diag W1,           compute dtype
    b0:  jax.Array   # (1, F*H1) f32
    b1:  jax.Array   # (1, F*H2) f32
    d: int
    h1: int
    h2: int


def _block_diag(w, f):
    """(k, n) -> (f*k, f*n) block-diagonal replication of w."""
    k, n = w.shape
    eye = jnp.eye(f, dtype=w.dtype)
    return (eye[:, None, :, None] * w[None, :, None, :]).reshape(f * k, f * n)


def fold_params(w0, b0, w1x, w1p, b1, compute_dtype=jnp.bfloat16):
    """Build the folded/block-diagonal weights ONCE; reuse across forward calls."""
    d, h1 = w0.shape
    h2 = w1x.shape[1]
    # prob = x[:, -2:] contribution expressed as a zero-padded (D, H2) weight so
    # it rides on the layer-0 matmul (no K=2 matmul, no lane-unaligned slice).
    wp = jnp.zeros((d, h2), w1p.dtype).at[d - 2:, :].set(w1p)
    w01 = jnp.concatenate([_block_diag(w0, F), _block_diag(wp, F)], axis=1)
    w1 = _block_diag(w1x, F)
    return FoldedParams(
        w01=w01.astype(compute_dtype),
        w1=w1.astype(compute_dtype),
        b0=jnp.tile(jnp.reshape(b0, (1, h1)).astype(jnp.float32), (1, F)),
        b1=jnp.tile(jnp.reshape(b1, (1, h2)).astype(jnp.float32), (1, F)),
        d=d, h1=h1, h2=h2)


def _device_defaults():
    """(block_rows, tanh_dtype) tuned per TPU generation."""
    try:
        kind = jax.devices()[0].device_kind.lower()
    except Exception:
        kind = ""
    if any(t in kind for t in ("v2", "v3", "v4", "v5")):
        # v5e & older: slow HBM already hides per-step overhead; no bf16 EUP/VPU.
        return 16384, jnp.float32
    # v6e / v7x: larger tiles to amortize ~0.35us/step overhead; bf16 tanh on EUP.
    return 32768, jnp.bfloat16


def residual_mlp_forward(x, params: FoldedParams, *, block_rows=None,
                         tanh_dtype=None, vmem_limit_bytes=48 * 1024 * 1024,
                         out_dtype=None):
    """Fused ResidualMLP forward. x: (B, D), streamed in its native dtype."""
    B, D = x.shape
    assert D == params.d, (D, params.d)
    H1, H2 = params.h1, params.h2
    def_rows, def_tanh = _device_defaults()
    block_rows = def_rows if block_rows is None else int(block_rows)
    tanh_dtype = def_tanh if tanh_dtype is None else tanh_dtype
    out_dtype = x.dtype if out_dtype is None else out_dtype

    # Pad only to a multiple of F*8 = 64 rows (keeps the folded row count
    # sublane-aligned); ragged last grid block is handled by Pallas masking.
    B_pad = pl.cdiv(B, F * 8) * (F * 8)
    xp = x if B_pad == B else jnp.pad(x, ((0, B_pad - B), (0, 0)))
    rows = B_pad // F
    x_folded = xp.reshape(rows, F * D)          # fold 8 batch rows into lanes

    # Batch tile: as big as the VMEM budget allows; prefer an even number of
    # grid steps so v7x's two TensorCores get balanced work (neutral elsewhere).
    tbf = max(8, min(block_rows // F, rows))
    tbf = (tbf // 8) * 8
    n_steps = pl.cdiv(rows, tbf)
    if n_steps > 1 and n_steps % 2 == 1:
        n_steps += 1
        tbf = pl.cdiv(pl.cdiv(rows, n_steps), 8) * 8
        n_steps = pl.cdiv(rows, tbf)

    kernel = functools.partial(residual_mlp_kernel, fold_h1=F * H1,
                               tanh_dtype=tanh_dtype)

    out_folded = pl.pallas_call(
        kernel,
        out_shape=jax.ShapeDtypeStruct((rows, F * H2), out_dtype),
        grid=(n_steps,),
        in_specs=[
            pl.BlockSpec((tbf, F * D), lambda i: (i, 0)),            # x (streamed)
            # Constant-index weights/biases stay VMEM-resident across steps.
            # (pl.Buffered(1) would shave their double-buffer; only matters when
            #  tile sizes are pushed to the VMEM ceiling, so left at default.)
            pl.BlockSpec((F * D, F * (H1 + H2)), lambda i: (0, 0)),  # [W0 | Wprob]
            pl.BlockSpec((F * H1, F * H2), lambda i: (0, 0)),        # W1
            pl.BlockSpec((1, F * H1), lambda i: (0, 0)),             # b0
            pl.BlockSpec((1, F * H2), lambda i: (0, 0)),             # b1
        ],
        out_specs=pl.BlockSpec((tbf, F * H2), lambda i: (i, 0)),
        compiler_params=pltpu.CompilerParams(
            dimension_semantics=("parallel",),   # megacore sharding on v7x
            vmem_limit_bytes=vmem_limit_bytes,
        ),
    )(x_folded, params.w01, params.w1, params.b0, params.b1)

    out = out_folded.reshape(B_pad, H2)
    return out if B_pad == B else out[:B]


def residual_mlp(x, w0, b0, w1x, w1p, b1, **kwargs):
    """Convenience wrapper folding raw weights per call (prefer fold_params + reuse)."""
    return residual_mlp_forward(x, fold_params(w0, b0, w1x, w1p, b1), **kwargs)


def init_params(key, input_dim, hidden_dims=(32, 32)):
    """Deterministic init matching nn.Linear shapes (weights stored as (in, out))."""
    H1, H2 = hidden_dims
    k0w, k0b, k1w, k1b = jax.random.split(key, 4)

    bound0 = 1.0 / jnp.sqrt(input_dim)
    w0 = jax.random.uniform(k0w, (input_dim, H1), jnp.float32, -bound0, bound0)
    b0 = jax.random.uniform(k0b, (1, H1), jnp.float32, -bound0, bound0)

    in1 = H1 + 2
    bound1 = 1.0 / jnp.sqrt(in1)
    w1_full = jax.random.uniform(k1w, (in1, H2), jnp.float32, -bound1, bound1)
    b1 = jax.random.uniform(k1b, (1, H2), jnp.float32, -bound1, bound1)

    w1x = w1_full[:H1, :]   # acts on hidden activations
    w1p = w1_full[H1:, :]   # acts on prob = x[:, -2:]
    return w0, b0, w1x, w1p, b1


def reference_forward(x, w0, b0, w1x, w1p, b1, compute_dtype=jnp.float32,
                      tanh_dtype=jnp.float32):
    """Pure-JAX reference; compute/tanh dtypes can mirror the kernel's casts."""
    cd = compute_dtype
    prob = x[:, -2:]
    h_pre = jnp.dot(x.astype(cd), w0.astype(cd),
                    preferred_element_type=jnp.float32) + b0
    p_pre = jnp.dot(prob.astype(cd), w1p.astype(cd),
                    preferred_element_type=jnp.float32)
    h = jnp.tanh(h_pre.astype(tanh_dtype))
    y_pre = (jnp.dot(h.astype(cd), w1x.astype(cd),
                     preferred_element_type=jnp.float32) + p_pre + b1)
    return jnp.tanh(y_pre.astype(tanh_dtype)).astype(jnp.float32)
    # dropout is identity in eval mode


if __name__ == "__main__":
    input_dim = 16
    hidden_dims = (32, 32)

    key = jax.random.PRNGKey(0)
    kx1, kx2, kp = jax.random.split(key, 3)
    raw = init_params(kp, input_dim, hidden_dims)
    folded = fold_params(*raw)                  # built once, reused per call
    _, tanh_dtype = _device_defaults()

    # Case 1: tiny batch (8 rows -> padded to 64, single grid step).
    x1 = jax.random.normal(kx1, (8, input_dim), jnp.float32)
    out1 = jax.block_until_ready(residual_mlp_forward(x1, folded))

    # Case 2: padding (200 -> 256 rows), two grid steps, ragged last block.
    x2 = jax.random.normal(kx2, (200, input_dim), jnp.float32)
    out2 = jax.block_until_ready(residual_mlp_forward(x2, folded, block_rows=192))

    for x, out in ((x1, out1), (x2, out2)):
        assert out.shape == (x.shape[0], hidden_dims[-1])
        out32 = out.astype(jnp.float32)
        ref_mimic = reference_forward(x, *raw, compute_dtype=jnp.bfloat16,
                                      tanh_dtype=tanh_dtype)
        ref_f32 = reference_forward(x, *raw)
        assert jnp.allclose(out32, ref_mimic, atol=1e-2, rtol=1e-2), \
            "mismatch vs dtype-mimicking reference"
        assert jnp.allclose(out32, ref_f32, atol=4e-2, rtol=0.0), \
            "mismatch vs f32 reference"

    print("KERNEL_OK")
</pallas_src>

<mosaic_0001>
module attributes {stable_mosaic.version = 11 : i64} {
  func.func @residual_mlp_kernel(%arg0: i32, %arg1: memref<8x128xf32, #tpu.memory_space<vmem>>, %arg2: memref<128x512xbf16, #tpu.memory_space<vmem>>, %arg3: memref<256x256xbf16, #tpu.memory_space<vmem>>, %arg4: memref<1x256xf32, #tpu.memory_space<vmem>>, %arg5: memref<1x256xf32, #tpu.memory_space<vmem>>, %arg6: memref<8x256xf32, #tpu.memory_space<vmem>>) attributes {dimension_semantics = [#tpu.dimension_semantics<parallel>], iteration_bounds = array<i64: 1>, scalar_prefetch = 0 : i64, scratch_operands = 0 : i64, tpu.core_type = #tpu.core_type<tc>, window_params = [{transform_indices = @transform_0, window_bounds = array<i64: 8, 128>}, {pipeline_mode = #tpu.pipeline_mode<synchronous>, transform_indices = @transform_1, window_bounds = array<i64: 128, 512>}, {pipeline_mode = #tpu.pipeline_mode<synchronous>, transform_indices = @transform_2, window_bounds = array<i64: 256, 256>}, {pipeline_mode = #tpu.pipeline_mode<synchronous>, transform_indices = @transform_3, window_bounds = array<i64: 1, 256>}, {pipeline_mode = #tpu.pipeline_mode<synchronous>, transform_indices = @transform_4, window_bounds = array<i64: 1, 256>}, {transform_indices = @transform_5, window_bounds = array<i64: 8, 256>}]} {
    %c0 = arith.constant 0 : index
    %c0_0 = arith.constant 0 : index
    %0 = vector.load %arg1[%c0, %c0_0] : memref<8x128xf32, #tpu.memory_space<vmem>>, vector<8x128xf32>
    %1 = arith.truncf %0 : vector<8x128xf32> to vector<8x128xbf16>
    %c0_1 = arith.constant 0 : index
    %c0_2 = arith.constant 0 : index
    %2 = vector.load %arg2[%c0_1, %c0_2] : memref<128x512xbf16, #tpu.memory_space<vmem>>, vector<128x512xbf16>
    %cst = arith.constant dense<0.000000e+00> : vector<8x512xf32>
    %3 = tpu.matmul %1, %2, %cst {dimension_numbers = #tpu.dot_dimension_numbers<[1], [0], [0], [1], [0, 0, 1, 1], [], []>} : vector<8x128xbf16>, vector<128x512xbf16>, vector<8x512xf32> -> vector<8x512xf32>
    %4 = vector.extract_strided_slice %3 {offsets = [0, 0], sizes = [8, 256], strides = [1, 1]} : vector<8x512xf32> to vector<8x256xf32>
    %c0_3 = arith.constant 0 : index
    %c0_4 = arith.constant 0 : index
    %5 = vector.load %arg4[%c0_3, %c0_4] : memref<1x256xf32, #tpu.memory_space<vmem>>, vector<1x256xf32>
    %6 = vector.broadcast %5 : vector<1x256xf32> to vector<8x256xf32>
    %7 = arith.addf %4, %6 : vector<8x256xf32>
    %8 = vector.extract_strided_slice %3 {offsets = [0, 256], sizes = [8, 256], strides = [1, 1]} : vector<8x512xf32> to vector<8x256xf32>
    %9 = arith.truncf %7 : vector<8x256xf32> to vector<8x256xbf16>
    %10 = math.tanh %9 : vector<8x256xbf16>
    %c0_5 = arith.constant 0 : index
    %c0_6 = arith.constant 0 : index
    %11 = vector.load %arg3[%c0_5, %c0_6] : memref<256x256xbf16, #tpu.memory_space<vmem>>, vector<256x256xbf16>
    %cst_7 = arith.constant dense<0.000000e+00> : vector<8x256xf32>
    %12 = tpu.matmul %10, %11, %cst_7 {dimension_numbers = #tpu.dot_dimension_numbers<[1], [0], [0], [1], [0, 0, 1, 1], [], []>} : vector<8x256xbf16>, vector<256x256xbf16>, vector<8x256xf32> -> vector<8x256xf32>
    %13 = arith.addf %12, %8 : vector<8x256xf32>
    %c0_8 = arith.constant 0 : index
    %c0_9 = arith.constant 0 : index
    %14 = vector.load %arg5[%c0_8, %c0_9] : memref<1x256xf32, #tpu.memory_space<vmem>>, vector<1x256xf32>
    %15 = vector.broadcast %14 : vector<1x256xf32> to vector<8x256xf32>
    %16 = arith.addf %13, %15 : vector<8x256xf32>
    %17 = arith.truncf %16 : vector<8x256xf32> to vector<8x256xbf16>
    %18 = math.tanh %17 : vector<8x256xbf16>
    %19 = arith.extf %18 : vector<8x256xbf16> to vector<8x256xf32>
    %c0_10 = arith.constant 0 : index
    %c0_11 = arith.constant 0 : index
    %20 = vector.load %arg6[%c0_10, %c0_11] : memref<8x256xf32, #tpu.memory_space<vmem>>, vector<8x256xf32>
    tpu.vector_store %arg6[%c0_10, %c0_11], %19 {strides = array<i32>} : memref<8x256xf32, #tpu.memory_space<vmem>>, vector<8x256xf32>,
    return
  }
  func.func @transform_0(%arg0: i32) -> (i32, i32) {
    %c0_i32 = arith.constant 0 : i32
    %c0_i32_0 = arith.constant 0 : i32
    return %arg0, %c0_i32 : i32, i32
  }
  func.func @transform_1(%arg0: i32) -> (i32, i32) {
    %c0_i32 = arith.constant 0 : i32
    %c0_i32_0 = arith.constant 0 : i32
    %c0_i32_1 = arith.constant 0 : i32
    return %c0_i32, %c0_i32_0 : i32, i32
  }
  func.func @transform_2(%arg0: i32) -> (i32, i32) {
    %c0_i32 = arith.constant 0 : i32
    %c0_i32_0 = arith.constant 0 : i32
    %c0_i32_1 = arith.constant 0 : i32
    return %c0_i32, %c0_i32_0 : i32, i32
  }
  func.func @transform_3(%arg0: i32) -> (i32, i32) {
    %c0_i32 = arith.constant 0 : i32
    %c0_i32_0 = arith.constant 0 : i32
    %c0_i32_1 = arith.constant 0 : i32
    return %c0_i32, %c0_i32_0 : i32, i32
  }
  func.func @transform_4(%arg0: i32) -> (i32, i32) {
    %c0_i32 = arith.constant 0 : i32
    %c0_i32_0 = arith.constant 0 : i32
    %c0_i32_1 = arith.constant 0 : i32
    return %c0_i32, %c0_i32_0 : i32, i32
  }
  func.func @transform_5(%arg0: i32) -> (i32, i32) {
    %c0_i32 = arith.constant 0 : i32
    %c0_i32_0 = arith.constant 0 : i32
    return %arg0, %c0_i32 : i32, i32
  }
}

</mosaic_0001>

<bundles_post_ra>
// kernel: tpu_custom_call.1
= control target key start
LH: loop header
LB: loop body
LE: loop exit
PB: predicated region body
PF: predicated region fallthrough
CT: control target
= control target key end

     0   :  { %10 = vsyncpa [#allocation3], 0  ;;  %s952_s0 = inlined_call_operand.hbm [shape: f32[8,128], index: 0, kind: input, shape index: {}]   ;;  %s953_s1 = inlined_call_operand.hbm [shape: bf16[128,512], index: 1, kind: input, shape index: {}]   ;;  %s954_s2 = inlined_call_operand.hbm [shape: bf16[256,256], index: 2, kind: input, shape index: {}]   ;;  %s955_s3 = inlined_call_operand.vmem [shape: f32[1,256], index: 3, kind: input, shape index: {}]   ;;  %s956_s4 = inlined_call_operand.vmem [shape: f32[1,256], index: 4, kind: input, shape index: {}]   ;;  %s957_s5 = inlined_call_operand.hbm [shape: f32[8,256], index: 5, kind: output, shape index: {}]  }
   0x1   :  { %11 = vsyncpa [#allocation6], 0 }
   0x2   :  { %12 = vsyncpa [#allocation4], 0  ;;  %s889_s18 = smov [#allocation5]  }
   0x3   :  { %s28_s19 = sshll.u32 %s889_s18, 4  ;;  %s29_s19 = int_to_ptr.vmem [resolvable:$true] %s28_s19 }
   0x4   :  { %s811_s20 = scalar_lea.vmem %s29_s19, 4096  ;;  %p816_p1 = scmp.lt.s32.totalorder %s29_s19, %s29_s19 }
   0x5   :  { %p812_p0 = scmp.ne.s32.totalorder %s29_s19, %s811_s20  ;;  %p817_p2 = scmp.lt.s32.totalorder %s811_s20, %s811_s20 }
   0x7   :  { %p818_p3 = por %p817_p2, %p816_p1 }
   0x9   :  { %p819_p4 = pnand %p818_p3, %p812_p0 }
   0xb   :  { %822 = shalt.err (!%p819_p4)
}
   0xc   :  { %s890_s21 = smov 256   ;;  %s891_s22 = smov 16  }
   0xd   :  { %34 = dma.hbm_to_vmem [thread:$0]  %s953_s1, 4096, %s29_s19, [#allocation6], %s890_s21, %s890_s21, %s891_s22  }
   0xe   :  { %s892_s25 = smov [#allocation2]   ;;  %s893_s27 = smov [#allocation7]  }
   0xf   :  { %s19_s26 = sshll.u32 %s892_s25, 4  ;;  %s40_s28 = sshll.u32 %s893_s27, 4  ;;  %s20_s26 = int_to_ptr.vmem [resolvable:$true] %s19_s26  ;;  %s41_s28 = int_to_ptr.vmem [resolvable:$true] %s40_s28 }
  0x10   :  { %s831_s29 = scalar_lea.vmem %s20_s26, 128  ;;  %p836_p6 = scmp.lt.s32.totalorder %s20_s26, %s20_s26 }
  0x11   :  { %p832_p5 = scmp.ne.s32.totalorder %s20_s26, %s831_s29  ;;  %p837_p7 = scmp.lt.s32.totalorder %s831_s29, %s831_s29 }
  0x13   :  { %p838_p8 = por %p837_p7, %p836_p6 }
  0x15   :  { %p839_p9 = pnand %p838_p8, %p832_p5 }
  0x17   :  { %842 = shalt.err (!%p839_p9)
}
  0x18   :  { %22 = dma.hbm_to_vmem [thread:$0]  %s952_s0, 128, %s20_s26, [#allocation3]  }
  0x19   :  { %s851_s7 = scalar_lea.vmem %s41_s28, 4096  ;;  %p856_p11 = scmp.lt.s32.totalorder %s41_s28, %s41_s28 }
  0x1a   :  { %p852_p10 = scmp.ne.s32.totalorder %s41_s28, %s851_s7  ;;  %p857_p12 = scmp.lt.s32.totalorder %s851_s7, %s851_s7 }
  0x1c   :  { %p858_p13 = por %p857_p12, %p856_p11 }
  0x1e   :  { %p859_p0 = pnand %p858_p13, %p852_p10 }
  0x20   :  { %862 = shalt.err (!%p859_p0)
}
  0x21   :  { %s894_s1 = smov 128   ;;  %s895_s8 = smov 8  }
  0x22   :  { %46 = dma.hbm_to_vmem [thread:$0]  %s954_s2, 4096, %s41_s28, [#allocation6], %s894_s1, %s894_s1, %s895_s8  }
  0x23   :  { %883 = dma.done.wait [#allocation3], 128  }
  0x24   :  { %884 = vsyncadd [#allocation3], 4294967168 }
  0x25   :  { %885 = dma.done.wait [#allocation6], 8192  }
  0x26   :  { %886 = vsyncadd [#allocation6], 4294959104  ;;  %v896_v0 = vmov 0   ;;  %v699_v1 = vld [vmem:[#allocation5 + $0xe4] ss:$16 sps:$4 sm:$0xff]   ;;  %v61_v26 = vld [vmem:[#allocation2] sm:$0xff] }
  0x27   :  { %287 = vmatprep.mubr.bf16.mxu1 %v896_v0  ;;  %v701_v2 = vld [vmem:[#allocation5 + $0xe0] ss:$16 sps:$4 sm:$0xff]   ;;  %255 = vmatprep.subr.bf16.mxu1 %v699_v1  ;;  %v702_v3 = vld [vmem:[#allocation5 + $0xc4] ss:$16 sps:$4 sm:$0xff]   ;;  %v746_v30 = vld [vmem:[#allocation5 + $0xec] ss:$16 sps:$4 sm:$0xff]   ;;  %v938_v33 = vpack.c.bf16 %v61_v26, %v61_v26 }
  0x28   :  { %256 = vmatpush1.bf16.msra.mxu1 %v701_v2  ;;  %v704_v4 = vld [vmem:[#allocation5 + $0xc0] ss:$16 sps:$4 sm:$0xff]   ;;  %v705_v5 = vld [vmem:[#allocation5 + $0xa4] ss:$16 sps:$4 sm:$0xff]   ;;  %v744_v32 = vld [vmem:[#allocation5 + $0xe8] ss:$16 sps:$4 sm:$0xff]  }
  0x29   :  { %257 = vmatprep.subr.bf16.mxu1 %v702_v3  ;;  %v707_v6 = vld [vmem:[#allocation5 + $0xa0] ss:$16 sps:$4 sm:$0xff]   ;;  %v708_v7 = vld [vmem:[#allocation5 + $0x84] ss:$16 sps:$4 sm:$0xff]   ;;  %v752_v34 = vld [vmem:[#allocation5 + $0xcc] ss:$16 sps:$4 sm:$0xff]   ;;  %v339_v3 = vlaneseq }
  0x2a   :  { %v710_v8 = vld [vmem:[#allocation5 + $0x80] ss:$16 sps:$4 sm:$0xff]   ;;  %v711_v9 = vld [vmem:[#allocation5 + $0x64] ss:$16 sps:$4 sm:$0xff]   ;;  %v750_v37 = vld [vmem:[#allocation5 + $0xc8] ss:$16 sps:$4 sm:$0xff]  }
  0x2b   :  { %v723_v10 = vld [vmem:[#allocation7 + $0x74] ss:$8 sps:$4 sm:$0xff]   ;;  %v725_v11 = vld [vmem:[#allocation7 + $0x70] ss:$8 sps:$4 sm:$0xff]   ;;  %v726_v12 = vld [vmem:[#allocation7 + $0x64] ss:$8 sps:$4 sm:$0xff]  }
  0x2c   :  { %258 = vmatpush1.bf16.msra.mxu1 %v704_v4  ;;  %547 = vmatprep.subr.bf16.mxu0 %v723_v10  ;;  %v713_v13 = vld [vmem:[#allocation5 + $0x60] ss:$16 sps:$4 sm:$0xff]   ;;  %v729_v15 = vld [vmem:[#allocation7 + $0x54] ss:$8 sps:$4 sm:$0xff]   ;;  %v732_v19 = vld [vmem:[#allocation7 + $0x44] ss:$8 sps:$4 sm:$0xff]  }
  0x2d   :  { %259 = vmatprep.subr.bf16.mxu1 %v705_v5  ;;  %548 = vmatpush1.bf16.msra.mxu0 %v725_v11  ;;  %v728_v14 = vld [vmem:[#allocation7 + $0x60] ss:$8 sps:$4 sm:$0xff]   ;;  %v714_v16 = vld [vmem:[#allocation5 + $0x44] ss:$16 sps:$4 sm:$0xff]   ;;  %v731_v18 = vld [vmem:[#allocation7 + $0x50] ss:$8 sps:$4 sm:$0xff]  }
  0x2e   :  { %549 = vmatprep.subr.bf16.mxu0 %v726_v12  ;;  %v716_v17 = vld [vmem:[#allocation5 + $0x40] ss:$16 sps:$4 sm:$0xff]   ;;  %v717_v20 = vld [vmem:[#allocation5 + $0x24] ss:$16 sps:$4 sm:$0xff]   ;;  %v758_v38 = vld [vmem:[#allocation5 + $0xac] ss:$16 sps:$4 sm:$0xff]  }
  0x2f   :  { %v719_v21 = vld [vmem:[#allocation5 + $0x20] ss:$16 sps:$4 sm:$0xff]   ;;  %v735_v23 = vld [vmem:[#allocation7 + $0x34] ss:$8 sps:$4 sm:$0xff]   ;;  %v738_v28 = vld [vmem:[#allocation7 + $0x24] ss:$8 sps:$4 sm:$0xff]  }
  0x30   :  { %260 = vmatpush1.bf16.msra.mxu1 %v707_v6  ;;  %v734_v22 = vld [vmem:[#allocation7 + $0x40] ss:$8 sps:$4 sm:$0xff]   ;;  %v720_v24 = vld [vmem:[#allocation5 + $0x4] ss:$16 sps:$4 sm:$0xff]   ;;  %v737_v27 = vld [vmem:[#allocation7 + $0x30] ss:$8 sps:$4 sm:$0xff]  }
  0x31   :  { %261 = vmatprep.subr.bf16.mxu1 %v708_v7  ;;  %550 = vmatpush1.bf16.msra.mxu0 %v728_v14  ;;  %v722_v25 = vld [vmem:[#allocation5] ss:$16 sps:$4 sm:$0xff]   ;;  %v741_v31 = vld [vmem:[#allocation7 + $0x14] ss:$8 sps:$4 sm:$0xff]   ;;  %v747_v36 = vld [vmem:[#allocation7 + $0x4] ss:$8 sps:$4 sm:$0xff]  }
  0x32   :  { %551 = vmatprep.subr.bf16.mxu0 %v729_v15  ;;  %v740_v29 = vld [vmem:[#allocation7 + $0x20] ss:$8 sps:$4 sm:$0xff]   ;;  %v743_v35 = vld [vmem:[#allocation7 + $0x10] ss:$8 sps:$4 sm:$0xff]   ;;  %v753_v40 = vld [vmem:[#allocation7 + $0xf4] ss:$8 sps:$4 sm:$0xff]  }
  0x33   :  { %v749_v39 = vld [vmem:[#allocation7] ss:$8 sps:$4 sm:$0xff]   ;;  %v764_v42 = vld [vmem:[#allocation5 + $0x8c] ss:$16 sps:$4 sm:$0xff]   ;;  %v755_v43 = vld [vmem:[#allocation7 + $0xf0] ss:$8 sps:$4 sm:$0xff]  }
  0x34   :  { %262 = vmatpush1.bf16.msra.mxu1 %v710_v8  ;;  %v756_v41 = vld [vmem:[#allocation5 + $0xa8] ss:$16 sps:$4 sm:$0xff]   ;;  %v759_v44 = vld [vmem:[#allocation7 + $0xe4] ss:$8 sps:$4 sm:$0xff]   ;;  %v765_v47 = vld [vmem:[#allocation7 + $0xd4] ss:$8 sps:$4 sm:$0xff]  }
  0x35   :  { %263 = vmatprep.subr.bf16.mxu1 %v711_v9  ;;  %552 = vmatpush1.bf16.msra.mxu0 %v731_v18  ;;  %v762_v45 = vld [vmem:[#allocation5 + $0x88] ss:$16 sps:$4 sm:$0xff]   ;;  %v770_v49 = vld [vmem:[#allocation5 + $0x6c] ss:$16 sps:$4 sm:$0xff]   ;;  %v340_v4 = vshrl.u32 %v339_v3, 7  ;;  %s897_s12 = smov [#allocation8]  }
  0x36   :  { %553 = vmatprep.subr.bf16.mxu0 %v732_v19  ;;  %v761_v46 = vld [vmem:[#allocation7 + $0xe0] ss:$8 sps:$4 sm:$0xff]   ;;  %v767_v48 = vld [vmem:[#allocation7 + $0xd0] ss:$8 sps:$4 sm:$0xff]   ;;  %v771_v51 = vld [vmem:[#allocation7 + $0xc4] ss:$8 sps:$4 sm:$0xff]  }
  0x37   :  { %v768_v50 = vld [vmem:[#allocation5 + $0x68] ss:$16 sps:$4 sm:$0xff]   ;;  %v776_v53 = vld [vmem:[#allocation5 + $0x4c] ss:$16 sps:$4 sm:$0xff]   ;;  %v341_v5 = vsub.s32 0, %v340_v4  ;;  %v345_v7 = vsub.s32 1, %v340_v4 }
  0x38   :  { %264 = vmatpush1.bf16.msra.mxu1 %v713_v13  ;;  %v773_v52 = vld [vmem:[#allocation7 + $0xc0] ss:$8 sps:$4 sm:$0xff]   ;;  %v777_v55 = vld [vmem:[#allocation7 + $0xb4] ss:$8 sps:$4 sm:$0xff]   ;;  %v779_v56 = vld [vmem:[#allocation7 + $0xb0] ss:$8 sps:$4 sm:$0xff]  }
  0x39   :  { %265 = vmatprep.subr.bf16.mxu1 %v714_v16  ;;  %554 = vmatpush1.bf16.msra.mxu0 %v734_v22  ;;  %v774_v54 = vld [vmem:[#allocation5 + $0x48] ss:$16 sps:$4 sm:$0xff]   ;;  %v782_v58 = vld [vmem:[#allocation5 + $0x2c] ss:$16 sps:$4 sm:$0xff]   ;;  %s616_s13 = sshll.u32 %s897_s12, 4  ;;  %s617_s13 = int_to_ptr.vmem [resolvable:$true] %s616_s13 }
  0x3a   :  { %555 = vmatprep.subr.bf16.mxu0 %v735_v23  ;;  %v780_v57 = vld [vmem:[#allocation5 + $0x28] ss:$16 sps:$4 sm:$0xff]   ;;  %v783_v59 = vld [vmem:[#allocation7 + $0xa4] ss:$8 sps:$4 sm:$0xff]   ;;  %v789_v62 = vld [vmem:[#allocation7 + $0x94] ss:$8 sps:$4 sm:$0xff]   ;;  %p868_p2 = scmp.lt.s32.totalorder %s617_s13, %s617_s13 }
  0x3b   :  { %v785_v60 = vld [vmem:[#allocation7 + $0xa0] ss:$8 sps:$4 sm:$0xff]   ;;  %v788_v61 = vld [vmem:[#allocation5 + $0xc] ss:$16 sps:$4 sm:$0xff]   ;;  %v337_v6 = vld [vmem:[%s955_s3] sm:$0x3] }
  0x3c   :  { %266 = vmatpush1.bf16.msra.mxu1 %v716_v17  ;;  %v786_v63 = vld [vmem:[#allocation5 + $0x8] ss:$16 sps:$4 sm:$0xff]   ;;  %v792_v1 = vld [vmem:[#allocation7 + $0x84] ss:$8 sps:$4 sm:$0xff]   ;;  %v342_v8 = vrot.slane %v337_v6, %v341_v5  ;;  %v346_v9 = vrot.slane %v337_v6, %v345_v7 }
  0x3d   :  { %267 = vmatprep.subr.bf16.mxu1 %v717_v20  ;;  %556 = vmatpush1.bf16.msra.mxu0 %v737_v27  ;;  %v794_v2 = vld [vmem:[#allocation7 + $0x80] ss:$8 sps:$4 sm:$0xff]  }
  0x3e   :  { %557 = vmatprep.subr.bf16.mxu0 %v738_v28 }
  0x40   :  { %268 = vmatpush1.bf16.msra.mxu1 %v719_v21 }
  0x41   :  { %269 = vmatprep.subr.bf16.mxu1 %v720_v24  ;;  %558 = vmatpush1.bf16.msra.mxu0 %v740_v29  ;;  %v588_v24 = vld [vmem:[%s956_s4] sm:$0x3]  ;;  %s863_s4 = scalar_lea.vmem %s617_s13, 256 }
  0x42   :  { %559 = vmatprep.subr.bf16.mxu0 %v741_v31  ;;  %v597_v28 = vrot.slane %v588_v24, %v345_v7  ;;  %p864_p1 = scmp.ne.s32.totalorder %s617_s13, %s863_s4  ;;  %p869_p3 = scmp.lt.s32.totalorder %s863_s4, %s863_s4 }
  0x44   :  { %270 = vmatpush1.bf16.msra.mxu1 %v722_v25  ;;  %v593_v25 = vrot.slane %v588_v24, %v341_v5  ;;  %p870_p4 = por %p869_p3, %p868_p2 }
  0x45   :  { %296 = vmatprep.subr.bf16.mxu1 %v746_v30  ;;  %560 = vmatpush1.bf16.msra.mxu0 %v743_v35 }
  0x46   :  { %561 = vmatprep.subr.bf16.mxu0 %v747_v36  ;;  %p871_p5 = pnand %p870_p4, %p864_p1 }
  0x47   :  { %288 = vmatmul.mubr.bf16.vlgmr.msra.gmra.mxu1 %v938_v33 }
  0x48   :  { %297 = vmatpush1.bf16.msra.mxu1 %v744_v32  ;;  %328 = vmatprep.mubr.bf16.mxu1 %v896_v0  ;;  %v791_v0 = vld [vmem:[#allocation7 + $0x90] ss:$8 sps:$4 sm:$0xff]  }
  0x49   :  { %298 = vmatprep.subr.bf16.mxu1 %v752_v34  ;;  %562 = vmatpush1.bf16.msra.mxu0 %v749_v39 }
  0x4a   :  { %563 = vmatprep.subr.bf16.mxu0 %v753_v40 }
  0x4c   :  { %299 = vmatpush1.bf16.msra.mxu1 %v750_v37 }
  0x4d   :  { %300 = vmatprep.subr.bf16.mxu1 %v758_v38  ;;  %564 = vmatpush2.bf16.msra.mxu0 %v755_v43 }
  0x4e   :  { %565 = vmatprep.subr.bf16.mxu0 %v759_v44 }
  0x50   :  { %301 = vmatpush1.bf16.msra.mxu1 %v756_v41 }
  0x51   :  { %302 = vmatprep.subr.bf16.mxu1 %v764_v42  ;;  %566 = vmatpush2.bf16.msra.mxu0 %v761_v46 }
  0x52   :  { %567 = vmatprep.subr.bf16.mxu0 %v765_v47 }
  0x54   :  { %303 = vmatpush1.bf16.msra.mxu1 %v762_v45 }
  0x55   :  { %568 = vmatpush2.bf16.msra.mxu0 %v767_v48  ;;  %304 = vmatprep.subr.bf16.mxu1 %v770_v49 }
  0x56   :  { %569 = vmatprep.subr.bf16.mxu0 %v771_v51 }
  0x58   :  { %305 = vmatpush1.bf16.msra.mxu1 %v768_v50 }
  0x59   :  { %570 = vmatpush2.bf16.msra.mxu0 %v773_v52  ;;  %306 = vmatprep.subr.bf16.mxu1 %v776_v53 }
  0x5a   :  { %571 = vmatprep.subr.bf16.mxu0 %v777_v55 }
  0x5c   :  { %307 = vmatpush1.bf16.msra.mxu1 %v774_v54 }
  0x5d   :  { %572 = vmatpush2.bf16.msra.mxu0 %v779_v56  ;;  %308 = vmatprep.subr.bf16.mxu1 %v782_v58 }
  0x5e   :  { %573 = vmatprep.subr.bf16.mxu0 %v783_v59 }
  0x60   :  { %309 = vmatpush1.bf16.msra.mxu1 %v780_v57 }
  0x61   :  { %310 = vmatprep.subr.bf16.mxu1 %v788_v61  ;;  %574 = vmatpush2.bf16.msra.mxu0 %v785_v60 }
  0x62   :  { %575 = vmatprep.subr.bf16.mxu0 %v789_v62 }
  0x64   :  { %311 = vmatpush1.bf16.msra.mxu1 %v786_v63 }
  0x65   :  { %576 = vmatpush2.bf16.msra.mxu0 %v791_v0 }
  0x66   :  { %577 = vmatprep.subr.bf16.mxu0 %v792_v1 }
  0x67   :  { %329 = vmatmul.mubr.bf16.vlgmr.msra.gmra.mxu1 %v938_v33 }
  0x69   :  { %578 = vmatpush2.bf16.msra.mxu0 %v794_v2 }
 0x107   :  { %v289_v10 = vpop.f32.mrf.mxu1 }
 0x108   :  { %v349_v11 = vadd.f32 %v342_v8, %v289_v10 }
 0x109   :  { %v291_v12 = vpop.f32.mrf.mxu1 }
 0x10a   :  { %v350_v13 = vadd.f32 %v346_v9, %v291_v12  ;;  %v351_v14 = vpack.c.bf16 %v349_v11, %v349_v11 }
 0x10b   :  { %v293_v15 = vpop.f32.mrf.mxu1 }
 0x10c   :  { %v352_v16 = vpack.c.bf16 %v350_v13, %v350_v13 }
 0x10d   :  { %v294_v17 = vpop.f32.mrf.mxu1 }
 0x10e   :  { %795 = vtanh.bf16 %v352_v16 }
 0x10f   :  { %797 = vtanh.bf16 %v351_v14 }
 0x11c   :  { %v796_v18 = vpop.eup %795 }
 0x11d   :  { %v798_v19 = vpop.eup %797  ;;  %579 = vmatprep.mubr.bf16.mxu0 %v796_v18 }
 0x11e   :  { %580 = vmatmul.mubr.bf16.vlgmr.msra.gmra.mxu0 %v798_v19 }
 0x127   :  { %v330_v20 = vpop.f32.mrf.mxu1 }
 0x129   :  { %v332_v21 = vpop.f32.mrf.mxu1 }
 0x12b   :  { %v334_v22 = vpop.f32.mrf.mxu1 }
 0x12d   :  { %v335_v23 = vpop.f32.mrf.mxu1 }
 0x1de   :  { %v581_v26 = vpop.f32.mrf.mxu0 }
 0x1df   :  { %v582_v27 = vadd.f32 %v581_v26, %v330_v20 }
 0x1e0   :  { %v583_v29 = vpop.f32.mrf.mxu0 }
 0x1e1   :  { %v600_v30 = vadd.f32 %v593_v25, %v582_v27  ;;  %v584_v31 = vadd.f32 %v583_v29, %v332_v21 }
 0x1e2   :  { %v585_v32 = vpop.f32.mrf.mxu0 }
 0x1e3   :  { %v602_v33 = vpack.c.bf16 %v600_v30, %v600_v30  ;;  %v601_v34 = vadd.f32 %v597_v28, %v584_v31 }
 0x1e4   :  { %v586_v35 = vpop.f32.mrf.mxu0 }
 0x1e5   :  { %799 = vtanh.bf16 %v602_v33  ;;  %v603_v36 = vpack.c.bf16 %v601_v34, %v601_v34 }
 0x1e7   :  { %801 = vtanh.bf16 %v603_v36 }
 0x1f3   :  { %v800_v37 = vpop.eup %799 }
 0x1f4   :  { %v606_v38 = vunpack.c.l.bf16 %v800_v37 }
 0x1f5   :  { %v802_v39 = vpop.eup %801 }
 0x1f6   :  { %v607_v40 = vunpack.c.l.bf16 %v802_v39  ;;  %608 = vst [vmem:[#allocation8] sm:$0xff] %v606_v38 }
 0x1f8   :  { %609 = vst [vmem:[#allocation8 + $0x8] sm:$0xff] %v607_v40 }
 0x1f9   :  { %874 = shalt.err (!%p871_p5)
}
 0x1fa   :  { %619 = dma.vmem_to_hbm [thread:$0]  %s617_s13, 256, %s957_s5, [#allocation4]  }
 0x1fb   :  { %887 = dma.done.wait [#allocation4], 256  }
 0x1fc   :  { %888 = vsyncadd [#allocation4], 4294967040 }
 0x1fd   :  { %623 = vsyncpa [#allocation3], 1 }
 0x1fe   :  { %624 = vsyncpa [#allocation6], 1 }
 0x1ff   :  { %625 = vsyncpa [#allocation4], 1 }

</bundles_post_ra>
